<compile_context>
chip_gen: v6e
topology: v6e:2x2x1
jax: 0.10.0
libtpu: 0.0.40
codegen_flags: <defaults>
</compile_context>

<pallas_src>
import functools

import jax
import jax.numpy as jnp
import numpy as np
from jax.experimental import pallas as pl
from jax.experimental.pallas import tpu as pltpu


_VMEM_LIMIT = 48 * 1024 * 1024  # safe on v7x (64 MiB/TC) and v5e/v6e (128 MiB)


def _pick_tile(dim, candidates):
    """Largest candidate that evenly divides `dim`, else the full dim."""
    for c in candidates:
        if dim >= c and dim % c == 0:
            return c
    return dim


# ----------------------------------------------------------------------------- kernels
def _linear_kernel(x_ref, w_ref, b_ref, o_ref, acc_ref):
    """Tiled y = x @ W + b, f32 VMEM accumulator over the K grid axis (bf16 MXU operands)."""
    @pl.when(pl.program_id(2) == 0)
    def _():
        acc_ref[...] = jnp.zeros_like(acc_ref)

    acc_ref[...] += jnp.dot(
        x_ref[...].astype(jnp.bfloat16),      # bf16 MXU operands,
        w_ref[...],                           # f32 accumulation
        preferred_element_type=jnp.float32)

    @pl.when(pl.program_id(2) == pl.num_programs(2) - 1)
    def _():
        o_ref[...] = (acc_ref[...] + b_ref[...]).astype(o_ref.dtype)


def _attention_kernel(q_ref, k_ref, v_ref, m_ref, out_ref, attn_ref, *,
                      num_heads, k_size, v_size, scale):
    """Scaled-dot-product attention for ALL heads of one batch element.

    Blocks: q (1, Lq, H*Dk)  k (1, Lk, H*Dk)  v (1, Lk, H*Dv)  m (1, Lq, Lk) int8
            out (1, Lq, H*Dv)                 attn (H, 1, Lq, Lk)
    """
    q_all = q_ref[0]                    # (Lq, H*Dk) bf16
    k_all = k_ref[0]                    # (Lk, H*Dk) bf16
    v_all = v_ref[0]                    # (Lk, H*Dv) bf16
    keep = m_ref[0] != 0                # (Lq, Lk) — mask compared ONCE, reused per head

    outs = []                           # per-head (Lq, Dv) f32
    probs = []                          # per-head (Lq, Lk) f32
    for h in range(num_heads):          # static unrolled head loop (one grid step = 1 batch)
        q = q_all[:, h * k_size:(h + 1) * k_size]
        k = k_all[:, h * k_size:(h + 1) * k_size]
        v = v_all[:, h * v_size:(h + 1) * v_size]

        # Q @ K^T without materializing K^T: contract last dims directly on the MXU.
        s = jax.lax.dot_general(q, k, (((1,), (1,)), ((), ())),
                                preferred_element_type=jnp.float32) * scale
        s = jnp.where(keep, s, jnp.float32(-1e9))

        # numerically-stable softmax; statistics in f32 (v5e has no bf16 VPU/EUP)
        s = s - jnp.max(s, axis=-1, keepdims=True)
        p = jnp.exp(s)
        p = p * pl.reciprocal(jnp.sum(p, axis=-1, keepdims=True), approx=True)

        outs.append(jnp.dot(p.astype(jnp.bfloat16), v, preferred_element_type=jnp.float32))
        probs.append(p)

    # single lane-dense stores per grid step (no per-head narrow masked stores):
    #   concat-head layout (Lq, H*Dv) and head-major weights (H, 1, Lq, Lk)
    out_ref[0] = jnp.concatenate(outs, axis=-1).astype(out_ref.dtype)
    attn_ref[...] = jnp.stack(probs, axis=0)[:, None, :, :]


def _fc_ln_kernel(x_ref, w_ref, b_ref, res_ref, g_ref, beta_ref, o_ref, *, eps):
    """fc(x) + residual, then LayerNorm over the feature dim (full row per M-tile)."""
    y = jnp.dot(x_ref[...], w_ref[...], preferred_element_type=jnp.float32)  # bf16 x bf16
    y = y + b_ref[...] + res_ref[...]
    mu = jnp.mean(y, axis=-1, keepdims=True)
    var = jnp.mean((y - mu) * (y - mu), axis=-1, keepdims=True)
    y = (y - mu) * jax.lax.rsqrt(var + eps)
    o_ref[...] = (y * g_ref[...] + beta_ref[...]).astype(o_ref.dtype)


# ----------------------------------------------------------------------------- wrappers
def _pallas_linear(x2d, w, b):
    """Tiled x @ W + b.  x2d (M, K) f32, w (K, N) bf16, b (N,) f32 -> (M, N) bf16."""
    M, K = x2d.shape
    N = w.shape[1]
    tm = _pick_tile(M, (256, 128, 64, 32, 16, 8))
    tn = _pick_tile(N, (512, 256, 128))
    tk = _pick_tile(K, (512, 256, 128))
    grid = (M // tm, N // tn, K // tk)
    return pl.pallas_call(
        _linear_kernel,
        out_shape=jax.ShapeDtypeStruct((M, N), jnp.bfloat16),
        grid=grid,
        in_specs=[
            pl.BlockSpec((tm, tk), lambda i, j, kk: (i, kk)),
            pl.BlockSpec((tk, tn), lambda i, j, kk: (kk, j)),
            pl.BlockSpec((1, tn), lambda i, j, kk: (0, j)),
        ],
        out_specs=pl.BlockSpec((tm, tn), lambda i, j, kk: (i, j)),
        scratch_shapes=[pltpu.VMEM((tm, tn), jnp.float32)],
        compiler_params=pltpu.CompilerParams(
            dimension_semantics=("parallel", "parallel", "arbitrary"),
            vmem_limit_bytes=_VMEM_LIMIT),
    )(x2d, w, b.reshape(1, N))


def _pallas_attention(qp, kp, vp, mask_i8, *, num_heads, k_size, v_size, temperature):
    """qp (B, Lq, H*Dk) bf16, kp (B, Lk, H*Dk) bf16, vp (B, Lk, H*Dv) bf16,
    mask_i8 (B, Lq, Lk) int8 -> out (B, Lq, H*Dv) bf16, attn (H, B, Lq, Lk) f32."""
    B, Lq, _ = qp.shape
    Lk = kp.shape[1]
    kernel = functools.partial(_attention_kernel, num_heads=num_heads, k_size=k_size,
                               v_size=v_size, scale=float(1.0 / temperature))
    # TODO(synk): for long sequences (Lq*Lk blocks exceeding VMEM) this would need a
    # flash-style online-softmax tiling over Lk; full-sequence blocks are fine here.
    out, attn = pl.pallas_call(
        kernel,
        out_shape=(
            jax.ShapeDtypeStruct((B, Lq, num_heads * v_size), qp.dtype),
            jax.ShapeDtypeStruct((num_heads, B, Lq, Lk), jnp.float32),
        ),
        grid=(B,),
        in_specs=[
            pl.BlockSpec((1, Lq, num_heads * k_size), lambda b: (b, 0, 0)),
            pl.BlockSpec((1, Lk, num_heads * k_size), lambda b: (b, 0, 0)),
            pl.BlockSpec((1, Lk, num_heads * v_size), lambda b: (b, 0, 0)),
            pl.BlockSpec((1, Lq, Lk), lambda b: (b, 0, 0)),        # mask: one batch slice
        ],
        out_specs=(
            pl.BlockSpec((1, Lq, num_heads * v_size), lambda b: (b, 0, 0)),
            pl.BlockSpec((num_heads, 1, Lq, Lk), lambda b: (0, b, 0, 0)),
        ),
        compiler_params=pltpu.CompilerParams(
            dimension_semantics=("parallel",),
            vmem_limit_bytes=_VMEM_LIMIT),
    )(qp, kp, vp, mask_i8)
    return out, attn


def _pallas_fc_residual_layernorm(x2d, w, b, res2d, gamma, beta, eps=1e-5):
    """x2d (M, K) bf16, w (K, N) bf16, res2d (M, N) f32 -> LayerNorm(x@W + b + res) f32."""
    M, K = x2d.shape
    N = w.shape[1]
    tm = _pick_tile(M, (256, 128, 64, 32, 16, 8))
    kernel = functools.partial(_fc_ln_kernel, eps=eps)
    # TODO(synk): for very large K (=H*Dv) this would need a K-tiled accumulate pass
    # before the LayerNorm statistics; full-K rows are fine at transformer sizes.
    return pl.pallas_call(
        kernel,
        out_shape=jax.ShapeDtypeStruct((M, N), jnp.float32),
        grid=(M // tm,),
        in_specs=[
            pl.BlockSpec((tm, K), lambda i: (i, 0)),
            pl.BlockSpec((K, N), lambda i: (0, 0)),
            pl.BlockSpec((1, N), lambda i: (0, 0)),
            pl.BlockSpec((tm, N), lambda i: (i, 0)),
            pl.BlockSpec((1, N), lambda i: (0, 0)),
            pl.BlockSpec((1, N), lambda i: (0, 0)),
        ],
        out_specs=pl.BlockSpec((tm, N), lambda i: (i, 0)),
        compiler_params=pltpu.CompilerParams(
            dimension_semantics=("parallel",),
            vmem_limit_bytes=_VMEM_LIMIT),
    )(x2d, w, b.reshape(1, N), res2d, gamma.reshape(1, N), beta.reshape(1, N))


# ----------------------------------------------------------------------------- module
class MultiHeadAttentionPallas:
    def __init__(self, transformer_size, num_heads, k_size, v_size, key):
        self.num_heads = num_heads
        self.k_size = k_size
        self.v_size = v_size
        self.d_model = transformer_size
        self.temperature = float(np.power(k_size, 0.5))

        keys = jax.random.split(key, 4)
        # init_wt_normal(weight, fan) ~ N(0, sqrt(2/fan)); weights stored as (in, out)
        # (already transposed vs torch's nn.Linear) and kept in bf16 (MXU-native,
        # halves weight DMA).  Biases / LayerNorm params stay f32.
        std_qk = np.sqrt(2.0 / (transformer_size + k_size))
        std_v = np.sqrt(2.0 / (transformer_size + v_size))
        self.wq = (jax.random.normal(keys[0], (transformer_size, num_heads * k_size)) * std_qk).astype(jnp.bfloat16)
        self.wk = (jax.random.normal(keys[1], (transformer_size, num_heads * k_size)) * std_qk).astype(jnp.bfloat16)
        self.wv = (jax.random.normal(keys[2], (transformer_size, num_heads * v_size)) * std_v).astype(jnp.bfloat16)
        self.bq = jnp.zeros((num_heads * k_size,), jnp.float32)
        self.bk = jnp.zeros((num_heads * k_size,), jnp.float32)
        self.bv = jnp.zeros((num_heads * v_size,), jnp.float32)

        std_fc = np.sqrt(2.0 / (num_heads * v_size + transformer_size))  # xavier_normal_
        self.w_fc = (jax.random.normal(keys[3], (num_heads * v_size, transformer_size)) * std_fc).astype(jnp.bfloat16)
        self.b_fc = jnp.zeros((transformer_size,), jnp.float32)

        self.ln_gamma = jnp.ones((transformer_size,), jnp.float32)
        self.ln_beta = jnp.zeros((transformer_size,), jnp.float32)

    def __call__(self, q, k, v, mask):
        """q,k,v: [B, L, D] f32,  mask: [B, Lq, Lk] (nonzero = attend, 0 = masked)."""
        B, Lq, D = q.shape
        Lk = k.shape[1]
        Lv = v.shape[1]
        H, Dk, Dv = self.num_heads, self.k_size, self.v_size
        residual = q

        # -------- Q/K/V projections (tiled Pallas matmuls, bf16 activations out) --------
        # TODO(synk): when q/k/v come from the same tensor (self-attention) the three
        # projections could be fused into one pallas_call with concatenated weights.
        qp = _pallas_linear(q.reshape(B * Lq, D), self.wq, self.bq).reshape(B, Lq, H * Dk)
        kp = _pallas_linear(k.reshape(B * Lk, D), self.wk, self.bk).reshape(B, Lk, H * Dk)
        vp = _pallas_linear(v.reshape(B * Lv, D), self.wv, self.bv).reshape(B, Lv, H * Dv)

        # mask passed ONCE as int8 (B, Lq, Lk); the per-head broadcast happens inside the
        # attention kernel instead of an H-times jnp.tile in HBM.
        mask_i8 = (mask != 0).astype(jnp.int8)

        # -------- scaled dot-product attention: grid over batch, all heads per step -----
        out, attn = _pallas_attention(qp, kp, vp, mask_i8, num_heads=H, k_size=Dk,
                                      v_size=Dv, temperature=self.temperature)
        # out  is already (B, Lq, H*Dv) concat-head layout  -> no XLA transpose.
        # attn is already head-major (H, B, Lq, Lk)          -> free reshape only.
        attn = attn.reshape(H * B, Lq, Lk)

        # -------- fc + dropout(eval=identity) + residual + LayerNorm (fused) ------------
        # TODO(synk): dropout omitted (inference / eval-mode identity).
        y = _pallas_fc_residual_layernorm(
            out.reshape(B * Lq, H * Dv), self.w_fc, self.b_fc,
            residual.reshape(B * Lq, D), self.ln_gamma, self.ln_beta)
        return y.reshape(B, Lq, D), attn


# ----------------------------------------------------------------------------- reference
def _reference(mha, q, k, v, mask):
    f32 = jnp.float32
    B, Lq, D = q.shape
    Lk = k.shape[1]
    H, Dk, Dv = mha.num_heads, mha.k_size, mha.v_size
    wq, wk, wv, wfc = (mha.wq.astype(f32), mha.wk.astype(f32),
                       mha.wv.astype(f32), mha.w_fc.astype(f32))
    qp = (q.reshape(B * Lq, D) @ wq + mha.bq).reshape(B, Lq, H, Dk)
    kp = (k.reshape(B * Lk, D) @ wk + mha.bk).reshape(B, Lk, H, Dk)
    vp = (v.reshape(B * Lk, D) @ wv + mha.bv).reshape(B, Lk, H, Dv)
    qh = jnp.transpose(qp, (2, 0, 1, 3)).reshape(H * B, Lq, Dk)
    kh = jnp.transpose(kp, (2, 0, 1, 3)).reshape(H * B, Lk, Dk)
    vh = jnp.transpose(vp, (2, 0, 1, 3)).reshape(H * B, Lk, Dv)
    mh = jnp.tile(mask, (H, 1, 1))
    sc = jnp.einsum("bqd,bkd->bqk", qh, kh) / mha.temperature
    sc = jnp.where(mh == 0.0, -1e9, sc)
    p = jax.nn.softmax(sc, axis=-1)
    oh = jnp.einsum("bqk,bkd->bqd", p, vh)
    out = jnp.transpose(oh.reshape(H, B, Lq, Dv), (1, 2, 0, 3)).reshape(B, Lq, H * Dv)
    y = out.reshape(B * Lq, H * Dv) @ wfc + mha.b_fc
    y = y + q.reshape(B * Lq, D)
    mu = jnp.mean(y, axis=-1, keepdims=True)
    var = jnp.mean((y - mu) ** 2, axis=-1, keepdims=True)
    y = (y - mu) / jnp.sqrt(var + 1e-5) * mha.ln_gamma + mha.ln_beta
    return y.reshape(B, Lq, D), p


# ----------------------------------------------------------------------------- main
if __name__ == "__main__":
    key = jax.random.PRNGKey(0)
    k_param, k_q, k_k, k_v, k_m = jax.random.split(key, 5)

    B, L, D = 2, 8, 32          # batch, seq, transformer_size
    H, Dk, Dv = 4, 8, 8         # num_heads, k_size, v_size

    mha = MultiHeadAttentionPallas(D, H, Dk, Dv, k_param)

    q = jax.random.normal(k_q, (B, L, D), jnp.float32)
    k = jax.random.normal(k_k, (B, L, D), jnp.float32)
    v = jax.random.normal(k_v, (B, L, D), jnp.float32)
    mask = (jax.random.uniform(k_m, (B, L, L)) > 0.2).astype(jnp.float32)
    mask = mask.at[..., 0].set(1.0)  # keep at least one attendable key per query row

    out, attn = mha(q, k, v, mask)
    out = jax.block_until_ready(out)
    attn = jax.block_until_ready(attn)

    ref_out, ref_attn = _reference(mha, q, k, v, mask)
    # bf16 MXU operands + approx reciprocal -> tolerances are looser than a pure-f32 run
    # (the f32 reference uses the same bf16-stored weights, promoted to f32).
    np.testing.assert_allclose(np.asarray(out), np.asarray(ref_out), atol=5e-2, rtol=5e-2)
    np.testing.assert_allclose(np.asarray(attn), np.asarray(ref_attn), atol=2e-2, rtol=2e-2)

    print("KERNEL_OK")
</pallas_src>

<mosaic_0001>
module attributes {stable_mosaic.version = 11 : i64} {
  func.func @_linear_kernel(%arg0: i32, %arg1: i32, %arg2: i32, %arg3: memref<16x32xf32, #tpu.memory_space<vmem>>, %arg4: memref<32x32xbf16, #tpu.memory_space<vmem>>, %arg5: memref<1x32xf32, #tpu.memory_space<vmem>>, %arg6: memref<16x32xbf16, #tpu.memory_space<vmem>>, %arg7: memref<16x32xf32, #tpu.memory_space<vmem>>) attributes {dimension_semantics = [#tpu.dimension_semantics<parallel>, #tpu.dimension_semantics<parallel>, #tpu.dimension_semantics<arbitrary>], iteration_bounds = array<i64: 1, 1, 1>, scalar_prefetch = 0 : i64, scratch_operands = 1 : i64, tpu.core_type = #tpu.core_type<tc>, window_params = [{transform_indices = @transform_0, window_bounds = array<i64: 16, 32>}, {transform_indices = @transform_1, window_bounds = array<i64: 32, 32>}, {transform_indices = @transform_2, window_bounds = array<i64: 1, 32>}, {transform_indices = @transform_3, window_bounds = array<i64: 16, 32>}]} {
    %c0_i32 = arith.constant 0 : i32
    %0 = arith.cmpi eq, %arg2, %c0_i32 : i32
    %1 = arith.extui %0 : i1 to i32
    %c0_i32_0 = arith.constant 0 : i32
    %2 = arith.cmpi ne, %1, %c0_i32_0 : i32
    scf.if %2 {
      %cst_10 = arith.constant 0.000000e+00 : f32
      %13 = vector.broadcast %cst_10 : f32 to vector<16x32xf32>
      %c0_11 = arith.constant 0 : index
      %c0_12 = arith.constant 0 : index
      %14 = vector.load %arg7[%c0_11, %c0_12] : memref<16x32xf32, #tpu.memory_space<vmem>>, vector<16x32xf32>
      tpu.vector_store %arg7[%c0_11, %c0_12], %13 {strides = array<i32>} : memref<16x32xf32, #tpu.memory_space<vmem>>, vector<16x32xf32>,
    } else {
    }
    %c0 = arith.constant 0 : index
    %c0_1 = arith.constant 0 : index
    %3 = vector.load %arg7[%c0, %c0_1] : memref<16x32xf32, #tpu.memory_space<vmem>>, vector<16x32xf32>
    %c0_2 = arith.constant 0 : index
    %c0_3 = arith.constant 0 : index
    %4 = vector.load %arg3[%c0_2, %c0_3] : memref<16x32xf32, #tpu.memory_space<vmem>>, vector<16x32xf32>
    %5 = arith.truncf %4 : vector<16x32xf32> to vector<16x32xbf16>
    %c0_4 = arith.constant 0 : index
    %c0_5 = arith.constant 0 : index
    %6 = vector.load %arg4[%c0_4, %c0_5] : memref<32x32xbf16, #tpu.memory_space<vmem>>, vector<32x32xbf16>
    %cst = arith.constant dense<0.000000e+00> : vector<16x32xf32>
    %7 = tpu.matmul %5, %6, %cst {dimension_numbers = #tpu.dot_dimension_numbers<[1], [0], [0], [1], [0, 0, 1, 1], [], []>} : vector<16x32xbf16>, vector<32x32xbf16>, vector<16x32xf32> -> vector<16x32xf32>
    %8 = arith.addf %3, %7 : vector<16x32xf32>
    %c0_6 = arith.constant 0 : index
    %c0_7 = arith.constant 0 : index
    %9 = vector.load %arg7[%c0_6, %c0_7] : memref<16x32xf32, #tpu.memory_space<vmem>>, vector<16x32xf32>
    tpu.vector_store %arg7[%c0_6, %c0_7], %8 {strides = array<i32>} : memref<16x32xf32, #tpu.memory_space<vmem>>, vector<16x32xf32>,
    %c0_i32_8 = arith.constant 0 : i32
    %10 = arith.cmpi eq, %arg2, %c0_i32_8 : i32
    %11 = arith.extui %10 : i1 to i32
    %c0_i32_9 = arith.constant 0 : i32
    %12 = arith.cmpi ne, %11, %c0_i32_9 : i32
    scf.if %12 {
      %c0_10 = arith.constant 0 : index
      %c0_11 = arith.constant 0 : index
      %13 = vector.load %arg7[%c0_10, %c0_11] : memref<16x32xf32, #tpu.memory_space<vmem>>, vector<16x32xf32>
      %c0_12 = arith.constant 0 : index
      %c0_13 = arith.constant 0 : index
      %14 = vector.load %arg5[%c0_12, %c0_13] : memref<1x32xf32, #tpu.memory_space<vmem>>, vector<1x32xf32>
      %15 = vector.broadcast %14 : vector<1x32xf32> to vector<16x32xf32>
      %16 = arith.addf %13, %15 : vector<16x32xf32>
      %17 = arith.truncf %16 : vector<16x32xf32> to vector<16x32xbf16>
      %c0_14 = arith.constant 0 : index
      %c0_15 = arith.constant 0 : index
      %18 = vector.load %arg6[%c0_14, %c0_15] : memref<16x32xbf16, #tpu.memory_space<vmem>>, vector<16x32xbf16>
      tpu.vector_store %arg6[%c0_14, %c0_15], %17 {strides = array<i32>} : memref<16x32xbf16, #tpu.memory_space<vmem>>, vector<16x32xbf16>,
    } else {
    }
    return
  }
  func.func @transform_0(%arg0: i32, %arg1: i32, %arg2: i32) -> (i32, i32) {
    %c0_i32 = arith.constant 0 : i32
    return %arg0, %arg2 : i32, i32
  }
  func.func @transform_1(%arg0: i32, %arg1: i32, %arg2: i32) -> (i32, i32) {
    %c0_i32 = arith.constant 0 : i32
    return %arg2, %arg1 : i32, i32
  }
  func.func @transform_2(%arg0: i32, %arg1: i32, %arg2: i32) -> (i32, i32) {
    %c0_i32 = arith.constant 0 : i32
    %c0_i32_0 = arith.constant 0 : i32
    return %c0_i32, %arg1 : i32, i32
  }
  func.func @transform_3(%arg0: i32, %arg1: i32, %arg2: i32) -> (i32, i32) {
    %c0_i32 = arith.constant 0 : i32
    return %arg0, %arg1 : i32, i32
  }
}

</mosaic_0001>

<bundles_post_ra>
// kernel: tpu_custom_call.1
= control target key start
LH: loop header
LB: loop body
LE: loop exit
PB: predicated region body
PF: predicated region fallthrough
CT: control target
= control target key end

     0   :  { %8 = vsyncpa [#allocation4], 0  ;;  %s312_s0 = inlined_call_operand.hbm [shape: f32[16,32], index: 0, kind: input, shape index: {}]   ;;  %s313_s1 = inlined_call_operand.hbm [shape: bf16[32,32], index: 1, kind: input, shape index: {}]   ;;  %s314_s2 = inlined_call_operand.vmem [shape: f32[1,32], index: 2, kind: input, shape index: {}]   ;;  %s315_s3 = inlined_call_operand.hbm [shape: bf16[16,32], index: 3, kind: output, shape index: {}]  }
   0x1   :  { %9 = vsyncpa [#allocation7], 0 }
   0x2   :  { %10 = vsyncpa [#allocation5], 0  ;;  %s260_s12 = smov [#allocation3]  }
   0x3   :  { %s16_s13 = sshll.u32 %s260_s12, 4  ;;  %s17_s13 = int_to_ptr.vmem [resolvable:$true] %s16_s13 }
   0x4   :  { %s202_s14 = scalar_lea.vmem %s17_s13, 256  ;;  %p207_p1 = scmp.lt.s32.totalorder %s17_s13, %s17_s13 }
   0x5   :  { %p203_p0 = scmp.ne.s32.totalorder %s17_s13, %s202_s14  ;;  %p208_p2 = scmp.lt.s32.totalorder %s202_s14, %s202_s14 }
   0x7   :  { %p209_p3 = por %p208_p2, %p207_p1 }
   0x9   :  { %p210_p4 = pnand %p209_p3, %p203_p0 }
   0xb   :  { %213 = shalt.err (!%p210_p4)
}
   0xc   :  { %s261_s15 = smov 128   ;;  %s262_s16 = smov 8  }
   0xd   :  { %22 = dma.hbm_to_vmem [thread:$0]  %s312_s0, 256, %s17_s13, [#allocation4], %s261_s15, %s261_s15, %s262_s16  }
   0xe   :  { %s263_s19 = smov [#allocation6]  }
   0xf   :  { %s28_s20 = sshll.u32 %s263_s19, 4  ;;  %s29_s20 = int_to_ptr.vmem [resolvable:$true] %s28_s20 }
  0x10   :  { %s222_s21 = scalar_lea.vmem %s29_s20, 256  ;;  %p227_p6 = scmp.lt.s32.totalorder %s29_s20, %s29_s20 }
  0x11   :  { %p223_p5 = scmp.ne.s32.totalorder %s29_s20, %s222_s21  ;;  %p228_p7 = scmp.lt.s32.totalorder %s222_s21, %s222_s21 }
  0x13   :  { %p229_p8 = por %p228_p7, %p227_p6 }
  0x15   :  { %p230_p9 = pnand %p229_p8, %p223_p5 }
  0x17   :  { %233 = shalt.err (!%p230_p9)
}
  0x18   :  { %s264_s22 = smov 64   ;;  %s265_s23 = smov 4  }
  0x19   :  { %34 = dma.hbm_to_vmem [thread:$0]  %s313_s1, 256, %s29_s20, [#allocation7], %s264_s22, %s264_s22, %s265_s23  }
  0x1a   :  { %254 = dma.done.wait [#allocation4], 256  }
  0x1b   :  { %255 = vsyncadd [#allocation4], 4294967040 }
  0x1c   :  { %256 = dma.done.wait [#allocation7], 256  }
  0x1d   :  { %257 = vsyncadd [#allocation7], 4294967040  ;;  %vm48_vm0 = vcmask 261120   ;;  %v266_v0 = vmov 0.0   ;;  %vm267_vm1 = vmmov 0   ;;  %v192_v1 = vld [vmem:[#allocation6 + $0x8] sm:$0xff]  }
  0x1e   :  { %175 = vmatprep.subr.bf16.mxu0 %v266_v0  ;;  %179 = vmatprep.mubr.msk.bf16.mxu0 %vm267_vm1, %v266_v0  ;;  %49 = vst.msk [vmem:[#allocation2] sm:$0xff] %vm48_vm0, %v266_v0  ;;  %50 = vst.msk [vmem:[#allocation2 + $0x8] sm:$0xff] %vm48_vm0, %v266_v0  ;;  %v193_v2 = vld [vmem:[#allocation6] sm:$0xff]   ;;  %v53_v3 = vld [vmem:[#allocation3] sm:$0xff]  ;;  %vm143_vm2 = vcmask 257024   ;;  %s268_s26 = smov [#allocation8]  }
  0x1f   :  { %176 = vmatpush3.bf16.msra.mxu0 %v192_v1  ;;  %v54_v4 = vld [vmem:[#allocation3 + $0x8] sm:$0xff]  ;;  %v167_v14 = vld [vmem:[%s314_s2] ss:$0 sm:$0xff]  ;;  %s151_s27 = sshll.u32 %s268_s26, 4  ;;  %s152_s27 = int_to_ptr.vmem [resolvable:$true] %s151_s27 }
  0x20   :  { %177 = vmatprep.subr.bf16.mxu0 %v266_v0  ;;  %v55_v5 = vpack.c.bf16 %v54_v4, %v53_v3  ;;  %s234_s28 = scalar_lea.vmem %s152_s27, 128  ;;  %p239_p11 = scmp.lt.s32.totalorder %s152_s27, %s152_s27 }
  0x21   :  { %p235_p10 = scmp.ne.s32.totalorder %s152_s27, %s234_s28  ;;  %p240_p12 = scmp.lt.s32.totalorder %s234_s28, %s234_s28 }
  0x23   :  { %178 = vmatpush3.bf16.msra.mxu0 %v193_v2  ;;  %p241_p13 = por %p240_p12, %p239_p11 }
  0x25   :  { %v51_v6 = vld [vmem:[#allocation2] sm:$0xff]  ;;  %v52_v10 = vld [vmem:[#allocation2 + $0x8] sm:$0xff]  ;;  %p242_p0 = pnand %p241_p13, %p235_p10 }
  0x26   :  { %180 = vmatmul.mubr.msk.bf16.vlgmr.msra.gmra.mxu0 %vm48_vm0, %v55_v5 }
  0xe6   :  { %v110_v7 = vpop.f32.mrf.mxu0 }
  0xe7   :  { %v117_v8 = vadd.f32 %v110_v7, %v51_v6 }
  0xe8   :  { %v181_v9 = vpop.f32.mrf.mxu0 }
  0xe9   :  { %119 = vst.msk [vmem:[#allocation2] sm:$0xff] %vm48_vm0, %v117_v8 }
  0xea   :  { %v113_v11 = vpop.f32.mrf.mxu0 }
  0xeb   :  { %v118_v12 = vadd.f32 %v113_v11, %v52_v10 }
  0xec   :  { %v182_v13 = vpop.f32.mrf.mxu0 }
  0xed   :  { %120 = vst.msk [vmem:[#allocation2 + $0x8] sm:$0xff] %vm48_vm0, %v118_v12 }
  0xf0   :  { %v124_v15 = vld [vmem:[#allocation2] sm:$0xff] }
  0xf1   :  { %v133_v16 = vadd.f32 %v167_v14, %v124_v15 }
  0xf3   :  { %v170_v17 = vpack.c.bf16 %v133_v16, %v133_v16 }
  0xf4   :  { %v125_v18 = vld [vmem:[#allocation2 + $0x8] sm:$0xff] }
  0xf5   :  { %v134_v19 = vadd.f32 %v167_v14, %v125_v18  ;;  %144 = vst.msk [vmem:[#allocation8] sm:$0xf] %vm143_vm2, %v170_v17 }
  0xf7   :  { %v171_v20 = vpack.c.bf16 %v134_v19, %v134_v19 }
  0xf9   :  { %145 = vst.msk [vmem:[#allocation8 + $0x4] sm:$0xf] %vm143_vm2, %v171_v20 }
  0xfa   :  { %245 = shalt.err (!%p242_p0)
}
  0xfb   :  { %157 = dma.vmem_to_hbm [thread:$0]  %s152_s27, 128, %s315_s3, [#allocation5], %s264_s22, %s264_s22, %s265_s23  }
  0xfc   :  { %258 = dma.done.wait [#allocation5], 128  }
  0xfd   :  { %259 = vsyncadd [#allocation5], 4294967168 }
  0xfe   :  { %161 = vsyncpa [#allocation4], 1 }
  0xff   :  { %162 = vsyncpa [#allocation7], 1 }
 0x100   :  { %163 = vsyncpa [#allocation5], 1 }

</bundles_post_ra>
